<compile_context>
chip_gen: v7x
topology: tpu7x:2x2x1
jax: 0.10.0
libtpu: 0.0.40
codegen_flags: <defaults>
</compile_context>

<pallas_src>
import jax
import jax.numpy as jnp
from jax.experimental import pallas as pl
from jax.experimental.pallas import tpu as pltpu

EPS = 1e-5


# ----------------------------- tiling helpers --------------------------------
def _vmem_budget_bytes():
    """Return (live-block budget, scoped-vmem limit to request) in bytes."""
    try:
        cap = int(pltpu.get_tpu_info().vmem_capacity_bytes)
    except Exception:
        cap = 64 << 20            # conservative default: v7x per-TC VMEM
    limit = min(cap // 2, 48 << 20)   # scoped limit requested from Mosaic
    return limit // 2, limit          # keep 2x headroom for compiler scratch


def _choose_tiles(n, cin, cout, hwp, itemsize, budget):
    """Pick (batch tile Bt, spatial tile T) so double-buffered blocks fit VMEM."""

    def live_bytes(bt, t):
        return (2 * bt * cin * t * itemsize          # x block (double-buffered)
                + 2 * bt * cout * t * 4              # out block (double-buffered)
                + bt * cout * t * 4                  # f32 matmul intermediate
                + 2 * cout * cin * itemsize          # weight block
                + 2 * max(cin * cin, 2 * cout) * 4)  # pass-1 accumulators

    # Spatial (lane) tile: largest multiple-of-128 divisor of hwp that fits the
    # budget at Bt=1, capped at 2048 (>=512 already ~85% of the HBM roofline).
    k = hwp // 128
    divisors = sorted((128 * d for d in range(1, k + 1) if k % d == 0),
                      reverse=True)
    t = divisors[-1]
    for cand in divisors:
        if cand <= 2048 and live_bytes(1, cand) <= budget:
            t = cand
            break

    # Batch tile: amortize per-step overhead for small spatial maps by pulling
    # several batch elements into one block (cap each step at ~4 MiB).
    target = min(budget, 4 << 20)
    bt = 1
    for cand in range(2, n + 1):
        if n % cand == 0 and live_bytes(cand, t) <= target:
            bt = cand
    return bt, t


# ----------------------------- pass 1 -----------------------------------------
# Sufficient statistics of the pre-BN conv output, accumulated along the
# innermost ("arbitrary") spatial-tile axis; batch-block and spatial-chunk axes
# are "parallel" so both v7x TensorCores get work even at N=1-2.

def _stats_gram_kernel(x_ref, gram_ref, xsum_ref):
    """Cout >= Cin path: gram += sum_p x x^T, xsum += sum_p x."""
    @pl.when(pl.program_id(2) == 0)
    def _():
        gram_ref[...] = jnp.zeros_like(gram_ref)
        xsum_ref[...] = jnp.zeros_like(xsum_ref)

    for b in range(x_ref.shape[0]):                       # static batch tile
        x = x_ref[b]                                      # (Cin, T) lanes=spatial
        gram_ref[...] += jax.lax.dot_general(             # x @ x^T, contract lanes
            x, x, (((1,), (1,)), ((), ())), preferred_element_type=jnp.float32)
        xsum_ref[...] += jnp.sum(x, axis=1, keepdims=True)


def _stats_y_kernel(x_ref, w_ref, ysum_ref, y2sum_ref):
    """Cin > Cout path: accumulate sum(Wx) and sum((Wx)^2) per output channel."""
    @pl.when(pl.program_id(2) == 0)
    def _():
        ysum_ref[...] = jnp.zeros_like(ysum_ref)
        y2sum_ref[...] = jnp.zeros_like(y2sum_ref)

    w = w_ref[...]                                        # (Cout, Cin)
    for b in range(x_ref.shape[0]):
        y = jnp.dot(w, x_ref[b], preferred_element_type=jnp.float32)  # (Cout, T)
        ysum_ref[...] += jnp.sum(y, axis=1, keepdims=True)
        y2sum_ref[...] += jnp.sum(y * y, axis=1, keepdims=True)


# ----------------------------- pass 2 -----------------------------------------
# Fused 1x1 conv (BN scale pre-folded into the weight) + shift + ReLU.
# Output block is (Bt, Cout, T) with T a multiple of 128 -> unmasked stores.
def _conv_bn_relu_kernel(x_ref, w_ref, shift_ref, o_ref):
    w = w_ref[...]
    shift = shift_ref[...]                                # (Cout, 1)
    for b in range(x_ref.shape[0]):                       # static batch tile
        y = jnp.dot(w, x_ref[b], preferred_element_type=jnp.float32)
        o_ref[b] = jnp.maximum(y + shift, 0.0)


# ----------------------------- wrapper ----------------------------------------
def conv_with_bn(x_nchw, weight, bias, gamma, beta, *, eps=EPS,
                 compute_dtype=jnp.float32):
    """x_nchw: (N, Cin, H, W).  weight: (Cout, Cin, 1, 1).  Returns NCHW f32.

    compute_dtype=jnp.bfloat16 halves the dominant pass-2 x-read bytes on
    v6e/v7x (accumulation stays f32) but loosens accuracy beyond the 1e-4
    check used below, so f32 is the default.
    """
    n, cin, h, w = x_nchw.shape
    cout = weight.shape[0]
    hw = h * w
    m = n * hw                                   # real element count per channel

    # Pad the spatial axis to a multiple of 128 so every store is lane-dense.
    hwp = ((hw + 127) // 128) * 128
    x3d = x_nchw.reshape(n, cin, hw).astype(jnp.float32)
    if hwp != hw:
        x3d = jnp.pad(x3d, ((0, 0), (0, 0), (0, hwp - hw)))

    budget, vmem_limit = _vmem_budget_bytes()
    bt, t_hw = _choose_tiles(n, cin, cout, hwp, 4, budget)
    nb = n // bt
    n_hw = hwp // t_hw
    p_sp = 2 if n_hw % 2 == 0 else 1             # parallel spatial chunks (v7x)
    n_hw_inner = n_hw // p_sp

    w2d = weight.reshape(cout, cin).astype(jnp.float32)
    bias = bias.astype(jnp.float32)
    gamma = gamma.astype(jnp.float32)
    beta = beta.astype(jnp.float32)

    cparams1 = pltpu.CompilerParams(
        dimension_semantics=("parallel", "parallel", "arbitrary"),
        vmem_limit_bytes=vmem_limit)
    cparams2 = pltpu.CompilerParams(
        dimension_semantics=("parallel", "parallel"),
        vmem_limit_bytes=vmem_limit)

    x_spec_p1 = pl.BlockSpec((bt, cin, t_hw),
                             lambda b, p, j: (b, 0, p * n_hw_inner + j))

    # --- pass 1: sufficient statistics (zero-padded tail contributes nothing) -
    if cout >= cin:
        gram_p, xsum_p = pl.pallas_call(
            _stats_gram_kernel,
            out_shape=(jax.ShapeDtypeStruct((nb, p_sp, cin, cin), jnp.float32),
                       jax.ShapeDtypeStruct((nb, p_sp, cin, 1), jnp.float32)),
            grid_spec=pltpu.PrefetchScalarGridSpec(
                num_scalar_prefetch=0,
                grid=(nb, p_sp, n_hw_inner),
                in_specs=[x_spec_p1],
                out_specs=[
                    pl.BlockSpec((None, None, cin, cin),
                                 lambda b, p, j: (b, p, 0, 0)),
                    pl.BlockSpec((None, None, cin, 1),
                                 lambda b, p, j: (b, p, 0, 0)),
                ]),
            compiler_params=cparams1,
        )(x3d)
        # TODO(synk): E[xx^T] - xbar xbar^T is cancellation-prone for strongly
        # non-centered activations; a centered/compensated accumulation would
        # tighten accuracy for such inputs.
        gram = jnp.sum(gram_p, axis=(0, 1))
        xbar = jnp.sum(xsum_p, axis=(0, 1))[:, 0] / m
        cov = gram / m - jnp.outer(xbar, xbar)
        mean = w2d @ xbar + bias
        var = jnp.einsum('oc,cd,od->o', w2d, cov, w2d)
    else:
        ysum_p, y2sum_p = pl.pallas_call(
            _stats_y_kernel,
            out_shape=(jax.ShapeDtypeStruct((nb, p_sp, cout, 1), jnp.float32),
                       jax.ShapeDtypeStruct((nb, p_sp, cout, 1), jnp.float32)),
            grid_spec=pltpu.PrefetchScalarGridSpec(
                num_scalar_prefetch=0,
                grid=(nb, p_sp, n_hw_inner),
                in_specs=[x_spec_p1,
                          pl.BlockSpec((cout, cin), lambda b, p, j: (0, 0))],
                out_specs=[
                    pl.BlockSpec((None, None, cout, 1),
                                 lambda b, p, j: (b, p, 0, 0)),
                    pl.BlockSpec((None, None, cout, 1),
                                 lambda b, p, j: (b, p, 0, 0)),
                ]),
            compiler_params=cparams1,
        )(x3d, w2d)
        ybar = jnp.sum(ysum_p, axis=(0, 1))[:, 0] / m
        mean = ybar + bias
        var = jnp.sum(y2sum_p, axis=(0, 1))[:, 0] / m - ybar * ybar

    # --- tiny BN fold into (scaled weight, shift) -----------------------------
    inv = jax.lax.rsqrt(jnp.maximum(var, 0.0) + eps)
    scale = gamma * inv
    w_scaled = (w2d * scale[:, None]).astype(compute_dtype)
    shift = ((bias - mean) * scale + beta).reshape(cout, 1)

    # --- pass 2: fused conv(1x1) + BN affine + ReLU, one lane-dense HBM write -
    x_p2 = x3d if compute_dtype == jnp.float32 else x3d.astype(compute_dtype)
    # TODO(synk): if a v7x bundle check shows exposed DMA (very small Cout),
    # bump the x BlockSpec to pipeline_mode=pl.Buffered(3).
    out3d = pl.pallas_call(
        _conv_bn_relu_kernel,
        out_shape=jax.ShapeDtypeStruct((n, cout, hwp), jnp.float32),
        grid_spec=pltpu.PrefetchScalarGridSpec(
            num_scalar_prefetch=0,
            grid=(nb, n_hw),
            in_specs=[
                pl.BlockSpec((bt, cin, t_hw), lambda b, j: (b, 0, j)),
                pl.BlockSpec((cout, cin), lambda b, j: (0, 0)),
                pl.BlockSpec((cout, 1), lambda b, j: (0, 0)),
            ],
            out_specs=pl.BlockSpec((bt, cout, t_hw), lambda b, j: (b, 0, j)),
        ),
        compiler_params=cparams2,
    )(x_p2, w_scaled, shift)

    if hwp != hw:
        out3d = out3d[:, :, :hw]
    return out3d.reshape(n, cout, h, w)


# ----------------------------- reference --------------------------------------
def _reference(x, weight, bias, gamma, beta, eps=EPS):
    """Pure-JAX reference: Conv2d(k=1,s=1) + BatchNorm2d(training) + ReLU."""
    cout, cin = weight.shape[0], weight.shape[1]
    y = jnp.einsum('nchw,oc->nohw', x, weight.reshape(cout, cin))
    y = y + bias[None, :, None, None]
    mean = jnp.mean(y, axis=(0, 2, 3), keepdims=True)
    var = jnp.mean((y - mean) ** 2, axis=(0, 2, 3), keepdims=True)  # biased
    yn = (y - mean) * jax.lax.rsqrt(var + eps)
    yn = yn * gamma[None, :, None, None] + beta[None, :, None, None]
    return jnp.maximum(yn, 0.0)


if __name__ == "__main__":
    key = jax.random.PRNGKey(0)

    def make_case(k, n, cin, cout, h, w):
        k_x, k_w, k_b, k_g, k_e = jax.random.split(k, 5)
        x = jax.random.normal(k_x, (n, cin, h, w), dtype=jnp.float32)
        wgt = 0.1 * jax.random.normal(k_w, (cout, cin, 1, 1), dtype=jnp.float32)
        b = 0.1 * jax.random.normal(k_b, (cout,), dtype=jnp.float32)
        g = 1.0 + 0.1 * jax.random.normal(k_g, (cout,), dtype=jnp.float32)
        be = 0.1 * jax.random.normal(k_e, (cout,), dtype=jnp.float32)
        return x, wgt, b, g, be

    k1, k2 = jax.random.split(key)

    # Case 1: Cout >= Cin -> Gram statistics path, spatial multiple of 128.
    x, wgt, b, g, be = make_case(k1, 2, 4, 8, 16, 16)
    out = jax.block_until_ready(conv_with_bn(x, wgt, b, g, be))
    ref = _reference(x, wgt, b, g, be)
    assert out.shape == (2, 8, 16, 16)
    assert jnp.allclose(out, ref, atol=1e-4, rtol=1e-4), "gram-path mismatch"

    # Case 2: Cin > Cout -> y-statistics path, ragged spatial (7*7 -> pad 128).
    x2, w2, b2, g2, be2 = make_case(k2, 2, 8, 4, 7, 7)
    out2 = jax.block_until_ready(conv_with_bn(x2, w2, b2, g2, be2))
    ref2 = _reference(x2, w2, b2, g2, be2)
    assert out2.shape == (2, 4, 7, 7)
    assert jnp.allclose(out2, ref2, atol=1e-4, rtol=1e-4), "y-stats-path mismatch"

    print("KERNEL_OK")
</pallas_src>

<mosaic_0001>
module attributes {stable_mosaic.version = 11 : i64} {
  func.func @_stats_gram_kernel(%arg0: i32, %arg1: i32, %arg2: i32, %arg3: memref<2x4x256xf32, #tpu.memory_space<vmem>>, %arg4: memref<1x1x4x4xf32, #tpu.memory_space<vmem>>, %arg5: memref<1x1x4x1xf32, #tpu.memory_space<vmem>>) attributes {dimension_semantics = [#tpu.dimension_semantics<parallel>, #tpu.dimension_semantics<parallel>, #tpu.dimension_semantics<arbitrary>], iteration_bounds = array<i64: 1, 1, 1>, scalar_prefetch = 0 : i64, scratch_operands = 0 : i64, tpu.core_type = #tpu.core_type<tc>, window_params = [{transform_indices = @transform_0, window_bounds = array<i64: 2, 4, 256>}, {transform_indices = @transform_1, window_bounds = array<i64: 1, 1, 4, 4>}, {transform_indices = @transform_2, window_bounds = array<i64: 1, 1, 4, 1>}]} {
    %c0_i32 = arith.constant 0 : i32
    %0 = arith.cmpi eq, %arg2, %c0_i32 : i32
    %1 = arith.extui %0 : i1 to i32
    %c0_i32_0 = arith.constant 0 : i32
    %2 = arith.cmpi ne, %1, %c0_i32_0 : i32
    scf.if %2 {
      %cst_40 = arith.constant 0.000000e+00 : f32
      %37 = vector.broadcast %cst_40 : f32 to vector<4x4xf32>
      %c0_41 = arith.constant 0 : index
      %c0_42 = arith.constant 0 : index
      %c0_43 = arith.constant 0 : index
      %c0_44 = arith.constant 0 : index
      %38 = vector.load %arg4[%c0_41, %c0_42, %c0_43, %c0_44] : memref<1x1x4x4xf32, #tpu.memory_space<vmem>>, vector<1x1x4x4xf32>
      %39 = vector.shape_cast %38 : vector<1x1x4x4xf32> to vector<4x4xf32>
      %40 = vector.shape_cast %37 : vector<4x4xf32> to vector<1x1x4x4xf32>
      tpu.vector_store %arg4[%c0_41, %c0_42, %c0_43, %c0_44], %40 {strides = array<i32>} : memref<1x1x4x4xf32, #tpu.memory_space<vmem>>, vector<1x1x4x4xf32>,
      %cst_45 = arith.constant 0.000000e+00 : f32
      %41 = vector.broadcast %cst_45 : f32 to vector<4x1xf32>
      %c0_46 = arith.constant 0 : index
      %c0_47 = arith.constant 0 : index
      %c0_48 = arith.constant 0 : index
      %c0_49 = arith.constant 0 : index
      %42 = vector.load %arg5[%c0_46, %c0_47, %c0_48, %c0_49] : memref<1x1x4x1xf32, #tpu.memory_space<vmem>>, vector<1x1x4x1xf32>
      %43 = vector.shape_cast %42 : vector<1x1x4x1xf32> to vector<4x1xf32>
      %44 = vector.shape_cast %41 : vector<4x1xf32> to vector<1x1x4x1xf32>
      tpu.vector_store %arg5[%c0_46, %c0_47, %c0_48, %c0_49], %44 {strides = array<i32>} : memref<1x1x4x1xf32, #tpu.memory_space<vmem>>, vector<1x1x4x1xf32>,
    } else {
    }
    %c0 = arith.constant 0 : index
    %c0_1 = arith.constant 0 : index
    %c0_2 = arith.constant 0 : index
    %3 = vector.load %arg3[%c0, %c0_1, %c0_2] : memref<2x4x256xf32, #tpu.memory_space<vmem>>, vector<1x4x256xf32>
    %4 = vector.shape_cast %3 : vector<1x4x256xf32> to vector<4x256xf32>
    %c0_3 = arith.constant 0 : index
    %c0_4 = arith.constant 0 : index
    %c0_5 = arith.constant 0 : index
    %c0_6 = arith.constant 0 : index
    %5 = vector.load %arg4[%c0_3, %c0_4, %c0_5, %c0_6] : memref<1x1x4x4xf32, #tpu.memory_space<vmem>>, vector<1x1x4x4xf32>
    %6 = vector.shape_cast %5 : vector<1x1x4x4xf32> to vector<4x4xf32>
    %cst = arith.constant dense<0.000000e+00> : vector<4x4xf32>
    %7 = tpu.matmul %4, %4, %cst {dimension_numbers = #tpu.dot_dimension_numbers<[1], [1], [0], [0], [0, 0, 1, 0], [], []>} : vector<4x256xf32>, vector<4x256xf32>, vector<4x4xf32> -> vector<4x4xf32>
    %8 = arith.addf %6, %7 : vector<4x4xf32>
    %c0_7 = arith.constant 0 : index
    %c0_8 = arith.constant 0 : index
    %c0_9 = arith.constant 0 : index
    %c0_10 = arith.constant 0 : index
    %9 = vector.load %arg4[%c0_7, %c0_8, %c0_9, %c0_10] : memref<1x1x4x4xf32, #tpu.memory_space<vmem>>, vector<1x1x4x4xf32>
    %10 = vector.shape_cast %9 : vector<1x1x4x4xf32> to vector<4x4xf32>
    %11 = vector.shape_cast %8 : vector<4x4xf32> to vector<1x1x4x4xf32>
    tpu.vector_store %arg4[%c0_7, %c0_8, %c0_9, %c0_10], %11 {strides = array<i32>} : memref<1x1x4x4xf32, #tpu.memory_space<vmem>>, vector<1x1x4x4xf32>,
    %c0_11 = arith.constant 0 : index
    %c0_12 = arith.constant 0 : index
    %c0_13 = arith.constant 0 : index
    %c0_14 = arith.constant 0 : index
    %12 = vector.load %arg5[%c0_11, %c0_12, %c0_13, %c0_14] : memref<1x1x4x1xf32, #tpu.memory_space<vmem>>, vector<1x1x4x1xf32>
    %13 = vector.shape_cast %12 : vector<1x1x4x1xf32> to vector<4x1xf32>
    %cst_15 = arith.constant dense<0.000000e+00> : vector<4xf32>
    %14 = vector.multi_reduction <add>, %4, %cst_15 [1] : vector<4x256xf32> to vector<4xf32>
    %15 = vector.shape_cast %14 : vector<4xf32> to vector<4x1xf32>
    %16 = arith.addf %13, %15 : vector<4x1xf32>
    %c0_16 = arith.constant 0 : index
    %c0_17 = arith.constant 0 : index
    %c0_18 = arith.constant 0 : index
    %c0_19 = arith.constant 0 : index
    %17 = vector.load %arg5[%c0_16, %c0_17, %c0_18, %c0_19] : memref<1x1x4x1xf32, #tpu.memory_space<vmem>>, vector<1x1x4x1xf32>
    %18 = vector.shape_cast %17 : vector<1x1x4x1xf32> to vector<4x1xf32>
    %19 = vector.shape_cast %16 : vector<4x1xf32> to vector<1x1x4x1xf32>
    tpu.vector_store %arg5[%c0_16, %c0_17, %c0_18, %c0_19], %19 {strides = array<i32>} : memref<1x1x4x1xf32, #tpu.memory_space<vmem>>, vector<1x1x4x1xf32>,
    %c1 = arith.constant 1 : index
    %c0_20 = arith.constant 0 : index
    %c0_21 = arith.constant 0 : index
    %20 = vector.load %arg3[%c1, %c0_20, %c0_21] : memref<2x4x256xf32, #tpu.memory_space<vmem>>, vector<1x4x256xf32>
    %21 = vector.shape_cast %20 : vector<1x4x256xf32> to vector<4x256xf32>
    %c0_22 = arith.constant 0 : index
    %c0_23 = arith.constant 0 : index
    %c0_24 = arith.constant 0 : index
    %c0_25 = arith.constant 0 : index
    %22 = vector.load %arg4[%c0_22, %c0_23, %c0_24, %c0_25] : memref<1x1x4x4xf32, #tpu.memory_space<vmem>>, vector<1x1x4x4xf32>
    %23 = vector.shape_cast %22 : vector<1x1x4x4xf32> to vector<4x4xf32>
    %cst_26 = arith.constant dense<0.000000e+00> : vector<4x4xf32>
    %24 = tpu.matmul %21, %21, %cst_26 {dimension_numbers = #tpu.dot_dimension_numbers<[1], [1], [0], [0], [0, 0, 1, 0], [], []>} : vector<4x256xf32>, vector<4x256xf32>, vector<4x4xf32> -> vector<4x4xf32>
    %25 = arith.addf %23, %24 : vector<4x4xf32>
    %c0_27 = arith.constant 0 : index
    %c0_28 = arith.constant 0 : index
    %c0_29 = arith.constant 0 : index
    %c0_30 = arith.constant 0 : index
    %26 = vector.load %arg4[%c0_27, %c0_28, %c0_29, %c0_30] : memref<1x1x4x4xf32, #tpu.memory_space<vmem>>, vector<1x1x4x4xf32>
    %27 = vector.shape_cast %26 : vector<1x1x4x4xf32> to vector<4x4xf32>
    %28 = vector.shape_cast %25 : vector<4x4xf32> to vector<1x1x4x4xf32>
    tpu.vector_store %arg4[%c0_27, %c0_28, %c0_29, %c0_30], %28 {strides = array<i32>} : memref<1x1x4x4xf32, #tpu.memory_space<vmem>>, vector<1x1x4x4xf32>,
    %c0_31 = arith.constant 0 : index
    %c0_32 = arith.constant 0 : index
    %c0_33 = arith.constant 0 : index
    %c0_34 = arith.constant 0 : index
    %29 = vector.load %arg5[%c0_31, %c0_32, %c0_33, %c0_34] : memref<1x1x4x1xf32, #tpu.memory_space<vmem>>, vector<1x1x4x1xf32>
    %30 = vector.shape_cast %29 : vector<1x1x4x1xf32> to vector<4x1xf32>
    %cst_35 = arith.constant dense<0.000000e+00> : vector<4xf32>
    %31 = vector.multi_reduction <add>, %21, %cst_35 [1] : vector<4x256xf32> to vector<4xf32>
    %32 = vector.shape_cast %31 : vector<4xf32> to vector<4x1xf32>
    %33 = arith.addf %30, %32 : vector<4x1xf32>
    %c0_36 = arith.constant 0 : index
    %c0_37 = arith.constant 0 : index
    %c0_38 = arith.constant 0 : index
    %c0_39 = arith.constant 0 : index
    %34 = vector.load %arg5[%c0_36, %c0_37, %c0_38, %c0_39] : memref<1x1x4x1xf32, #tpu.memory_space<vmem>>, vector<1x1x4x1xf32>
    %35 = vector.shape_cast %34 : vector<1x1x4x1xf32> to vector<4x1xf32>
    %36 = vector.shape_cast %33 : vector<4x1xf32> to vector<1x1x4x1xf32>
    tpu.vector_store %arg5[%c0_36, %c0_37, %c0_38, %c0_39], %36 {strides = array<i32>} : memref<1x1x4x1xf32, #tpu.memory_space<vmem>>, vector<1x1x4x1xf32>,
    return
  }
  func.func @transform_0(%arg0: i32, %arg1: i32, %arg2: i32) -> (i32, i32, i32) {
    %c1_i32 = arith.constant 1 : i32
    %0 = arith.muli %arg1, %c1_i32 : i32
    %1 = arith.addi %0, %arg2 : i32
    %c0_i32 = arith.constant 0 : i32
    %c0_i32_0 = arith.constant 0 : i32
    return %arg0, %c0_i32, %1 : i32, i32, i32
  }
  func.func @transform_1(%arg0: i32, %arg1: i32, %arg2: i32) -> (i32, i32, i32, i32) {
    %c0_i32 = arith.constant 0 : i32
    %c0_i32_0 = arith.constant 0 : i32
    %c0_i32_1 = arith.constant 0 : i32
    return %arg0, %arg1, %c0_i32, %c0_i32_0 : i32, i32, i32, i32
  }
  func.func @transform_2(%arg0: i32, %arg1: i32, %arg2: i32) -> (i32, i32, i32, i32) {
    %c0_i32 = arith.constant 0 : i32
    %c0_i32_0 = arith.constant 0 : i32
    %c0_i32_1 = arith.constant 0 : i32
    return %arg0, %arg1, %c0_i32, %c0_i32_0 : i32, i32, i32, i32
  }
}

</mosaic_0001>

<bundles_post_ra>
// kernel: tpu_custom_call.1
= control target key start
LH: loop header
LB: loop body
LE: loop exit
PB: predicated region body
PF: predicated region fallthrough
CT: control target
= control target key end

     0   :  { %8 = vsyncpa [#allocation3], 0  ;;  %s349_s0 = inlined_call_operand.hbm [shape: f32[2,4,256], index: 0, kind: input, shape index: {}]   ;;  %s350_s1 = inlined_call_operand.hbm [shape: f32[1,1,4,4], index: 1, kind: output, shape index: {0}]   ;;  %s351_s2 = inlined_call_operand.vmem [shape: f32[1,1,4,1], index: 2, kind: output, shape index: {1}]  }
   0x1   :  { %9 = vsyncpa [#allocation4], 0  ;;  %s287_s9 = smov [#allocation2]   ;;  %s239_s13 = scalar_lea.hbm %s349_s0, 256 }
   0x2   :  { %s19_s10 = sshll.u32 %s287_s9, 4  ;;  %p240_p0 = scmp.ne.s32.totalorder %s349_s0, %s239_s13  ;;  %s20_s10 = int_to_ptr.vmem [resolvable:$true] %s19_s10 }
   0x3   :  { %p243_p1 = scmp.lt.u32.totalorder %s239_s13, %s349_s0 }
   0x5   :  { %p245_p2 = pnand %p243_p1, %p240_p0 }
   0x7   :  { %248 = shalt.err (!%p245_p2)
}
   0x8   :  { %s249_s18 = scalar_lea.vmem %s20_s10, 256  ;;  %p254_p4 = scmp.lt.s32.totalorder %s20_s10, %s20_s10 }
   0x9   :  { %p250_p3 = scmp.ne.s32.totalorder %s20_s10, %s249_s18  ;;  %p255_p5 = scmp.lt.s32.totalorder %s249_s18, %s249_s18 }
   0xb   :  { %p256_p6 = por %p255_p5, %p254_p4 }
   0xd   :  { %p257_p7 = pnand %p256_p6, %p250_p3 }
   0xf   :  { %260 = shalt.err (!%p257_p7)
}
  0x10   :  { %s288_s19 = smov 128   ;;  %s289_s20 = smov 8  }
  0x11   :  { %25 = dma.hbm_to_vmem [thread:$0]  %s349_s0, 256, %s20_s10, [#allocation3], %s288_s19, %s288_s19, %s289_s20  }
  0x12   :  { %283 = dma.done.wait [#allocation3], 256  }
  0x13   :  { %284 = vsyncadd [#allocation3], 4294967040  ;;  %vm35_vm0 = vcmask 27648   ;;  %v290_v0 = vmov 0.0   ;;  %vm118_vm1 = vcmask 1043456   ;;  %v39_v1 = vld [vmem:[#allocation2] sm:$0xff] }
  0x14   :  { %36 = vst.msk [vmem:[#allocation5] sm:$0xf] %vm35_vm0, %v290_v0  ;;  %v128_v2 = vld [vmem:[#allocation2 + $0x8] sm:$0xff]  ;;  %v42_v3 = vcombine.high %v39_v1, %v39_v1  ;;  %v119_v5 = vsel %vm118_vm1, %v39_v1, 0.0  ;;  %vm37_vm2 = vcmask 3072   ;;  %s291_s4 = smov [#allocation5]  }
  0x15   :  { %v131_v4 = vcombine.high %v128_v2, %v128_v2  ;;  %v206_v7 = vsel %vm118_vm1, %v128_v2, 0.0  ;;  %38 = vst.msk [vmem:[%s351_s2] sm:$0xf] %vm37_vm2, %v290_v0  ;;  %s219_s5 = sshll.u32 %s291_s4, 4  ;;  %s220_s5 = int_to_ptr.vmem [resolvable:$true] %s219_s5 }
  0x16   :  { %44 = vmatprep.subr.mxu0 %v42_v3  ;;  %108 = vmatprep.mubr.f32.mxu0 %v42_v3  ;;  %v120_v6 = vsel %vm118_vm1, %v42_v3, 0.0  ;;  %s261_s6 = scalar_lea.vmem %s220_s5, 64  ;;  %p266_p9 = scmp.lt.s32.totalorder %s220_s5, %s220_s5 }
  0x17   :  { %v207_v8 = vsel %vm118_vm1, %v131_v4, 0.0  ;;  %45 = vmatpush1.xpose.msra.mxu0 %v39_v1  ;;  %133 = vmatprep.subr.mxu1 %v131_v4  ;;  %v121_v9 = vadd.f32 %v120_v6, %v119_v5  ;;  %p262_p8 = scmp.ne.s32.totalorder %s220_s5, %s261_s6  ;;  %p267_p10 = scmp.lt.s32.totalorder %s261_s6, %s261_s6 }
  0x18   :  { %134 = vmatpush1.xpose.msra.mxu1 %v128_v2  ;;  %197 = vmatprep.mubr.f32.mxu1 %v131_v4  ;;  %v208_v10 = vadd.f32 %v207_v8, %v206_v7 }
  0x19   :  { %122 = vadd.xlane.f32.xlu0 %v121_v9  ;;  %p268_p11 = por %p267_p10, %p266_p9 }
  0x1a   :  { %109 = vmatmul.mubr.f32.vlgmr.msra.gmra.mrb[0].mxu0 %v39_v1 }
  0x1b   :  { %198 = vmatmul.mubr.f32.vlgmr.msra.gmra.mrb[0].mxu1 %v128_v2  ;;  %v40_v17 = vld [vmem:[#allocation5] sm:$0xf]  ;;  %p269_p12 = pnand %p268_p11, %p262_p8 }
  0x1c   :  { %v117_v11 = vld [vmem:[%s351_s2] sm:$0xf] }
  0x1d   :  { %209 = vadd.xlane.f32.xlu0 %v208_v10 }
  0xa6   :  { %v123_v12 = vpop.xlane.xlu0 %122 }
  0xa7   :  { %v124_v13 = vadd.f32 %v123_v12, %v117_v11 }
  0xa9   :  { %126 = vst.msk [vmem:[%s351_s2] sm:$0xf] %vm37_vm2, %v124_v13 }
  0xaa   :  { %v210_v14 = vpop.xlane.xlu0 %209 }
  0xb0   :  { %v205_v15 = vld [vmem:[%s351_s2] sm:$0xf] }
  0xb1   :  { %v211_v16 = vadd.f32 %v210_v14, %v205_v15 }
  0xb3   :  { %212 = vst.msk [vmem:[%s351_s2] sm:$0xf] %vm37_vm2, %v211_v16 }
  0xed   :  { %v110_v18 = vpop.f32.mrb[0].mxu0 }
  0xee   :  { %v114_v19 = vadd.f32 %v110_v18, %v40_v17  ;;  %v112_v20 = vpop.f32.mrb[1].mxu0  ;;  %v199_v21 = vpop.f32.mrb[0].mxu1 }
  0xef   :  { %v201_v22 = vpop.f32.mrb[1].mxu1 }
  0xf0   :  { %116 = vst.msk [vmem:[#allocation5] sm:$0xf] %vm35_vm0, %v114_v19 }
  0xf7   :  { %v129_v23 = vld [vmem:[#allocation5] sm:$0xf] }
  0xf8   :  { %v203_v24 = vadd.f32 %v199_v21, %v129_v23 }
  0xfa   :  { %204 = vst.msk [vmem:[#allocation5] sm:$0xf] %vm35_vm0, %v203_v24 }
  0xfb   :  { %272 = shalt.err (!%p269_p12)
}
  0xfc   :  { %s273_s8 = scalar_lea.hbm %s350_s1, 64 }
  0xfd   :  { %p274_p13 = scmp.ne.s32.totalorder %s350_s1, %s273_s8  ;;  %p277_p0 = scmp.lt.u32.totalorder %s273_s8, %s350_s1 }
  0xff   :  { %p279_p1 = pnand %p277_p0, %p274_p13 }
 0x101   :  { %282 = shalt.err (!%p279_p1)
}
 0x102   :  { %222 = dma.vmem_to_hbm [thread:$0]  %s220_s5, 64, %s350_s1, [#allocation4]  }
 0x103   :  { %285 = dma.done.wait [#allocation4], 64  }
 0x104   :  { %286 = vsyncadd [#allocation4], 4294967232 }
 0x105   :  { %230 = vsyncpa [#allocation3], 1 }
 0x106   :  { %231 = vsyncpa [#allocation4], 1 }

</bundles_post_ra>
